<compile_context>
chip_gen: v5e
topology: v5e:2x2
jax: 0.10.0
libtpu: 0.0.40
codegen_flags: <defaults>
</compile_context>

<pallas_src>
import jax
import jax.numpy as jnp
from jax.experimental import pallas as pl
from jax.experimental.pallas import tpu as pltpu


def _cdiv(a, b):
    return -(-a // b)


def _vmem_capacity_bytes():
    """Physical per-TensorCore VMEM (v5e/v6e: 128 MiB, v7x: 64 MiB)."""
    try:
        cap = int(pltpu.get_tpu_info().vmem_capacity_bytes)
        if cap > 0:
            return cap
    except Exception:
        pass
    return 64 * 1024 * 1024  # conservative default (v7x-sized)


def _vmem_limit_bytes(needed_bytes, cap):
    # Enough scoped VMEM for the chosen blocks (+25% slack, >= 32 MiB) but leave ~15% of
    # physical VMEM as headroom for compiler-internal scratch (important on v7x's 64 MiB).
    return int(min(max(int(1.25 * needed_bytes), 32 * 1024 * 1024), int(0.85 * cap)))


# ----------------------------------- kernels -----------------------------------------------


def pos_embed_kernel(emb_ref, cls_ref, pos_ref, out_ref):
    """Main path: one batch tile per grid step, full (S, H) / (S+1, H) blocks.

    emb_ref: (TB, S,   H)  batch tile of patch embeddings (streamed)
    cls_ref: (1,  1,   H)  shared [CLS] token        (constant block index -> resident)
    pos_ref: (1,  S+1, H)  shared positional embeds  (constant block index -> resident)
    out_ref: (TB, S+1, H)
    """
    tb, _, h = out_ref.shape
    # Row 0: cls + pos[0], broadcast over the batch tile.
    cls_row = (cls_ref[...] + pos_ref[:, :1, :]).astype(out_ref.dtype)
    out_ref[:, :1, :] = jnp.broadcast_to(cls_row, (tb, 1, h))
    # Rows 1..S: patch embeddings + pos[1:].
    out_ref[:, 1:, :] = (emb_ref[...] + pos_ref[:, 1:, :]).astype(out_ref.dtype)


def pos_embed_seq_kernel(emb_pad_ref, cls_ref, pos_ref, out_ref):
    """Fallback path: (batch, seq-chunk) grid for very large per-sample slabs.

    emb_pad_ref: (TB, TS, H)  patch embeddings pre-padded with one dummy leading row so the
                              input / pos / output sequence axes align block-for-block
    cls_ref:     (1,  1,  H)  shared [CLS] token (resident)
    pos_ref:     (1,  TS, H)  positional-embedding chunk (streamed)
    out_ref:     (TB, TS, H)
    """
    out_ref[...] = (emb_pad_ref[...] + pos_ref[...]).astype(out_ref.dtype)

    @pl.when(pl.program_id(1) == 0)
    def _():
        tb, _, h = out_ref.shape
        cls_row = (cls_ref[...] + pos_ref[:, :1, :]).astype(out_ref.dtype)
        out_ref[:, :1, :] = jnp.broadcast_to(cls_row, (tb, 1, h))


# ----------------------------------- wrapper -----------------------------------------------


def position_embedding(embeddings, cls_token, position_embeddings,
                       *, _force_block_budget_bytes=None):
    """embeddings: (B, S, H); cls_token: (1, 1, H); position_embeddings: (1, S+1, H)."""
    B, S, H = embeddings.shape
    S1 = S + 1
    assert cls_token.shape == (1, 1, H)
    assert position_embeddings.shape == (1, S1, H)
    dt = jnp.dtype(embeddings.dtype).itemsize

    cap = _vmem_capacity_bytes()
    # ~70% of physical VMEM is the budget for the double-buffered streaming blocks.
    budget = int(0.70 * cap) if _force_block_budget_bytes is None else int(_force_block_budget_bytes)

    def _call(kernel, grid, in_specs, out_spec, dim_sem, needed_bytes, args, buffered_params):
        # buffered_params: indices of in_specs with a constant block index; give them a single
        # VMEM buffer (they're DMA'd once) when pipeline_mode=pl.Buffered(1) is supported.
        def build(use_single_buffer):
            specs = []
            for idx, (shape, imap) in enumerate(in_specs):
                if use_single_buffer and idx in buffered_params:
                    specs.append(pl.BlockSpec(shape, imap, pipeline_mode=pl.Buffered(1)))
                else:
                    specs.append(pl.BlockSpec(shape, imap))
            return pl.pallas_call(
                kernel,
                out_shape=jax.ShapeDtypeStruct((B, S1, H), embeddings.dtype),
                grid_spec=pltpu.PrefetchScalarGridSpec(
                    num_scalar_prefetch=0,
                    grid=grid,
                    in_specs=specs,
                    out_specs=pl.BlockSpec(*out_spec),
                ),
                compiler_params=pltpu.CompilerParams(
                    dimension_semantics=dim_sem,
                    vmem_limit_bytes=_vmem_limit_bytes(needed_bytes, cap),
                ),
            )

        try:
            return build(True)(*args)
        except Exception:
            # Pallas version without pipeline_mode / Buffered(1): plain double buffering.
            return build(False)(*args)

    # -------- Main path: batch-axis tiling only, full (S, H) per block. --------
    per_sample_block_bytes = 2 * (S * H + S1 * H) * dt   # double-buffered emb + out blocks
    tb = min(B, budget // per_sample_block_bytes)

    if tb >= 1:
        steps = _cdiv(B, tb)
        # Prefer an even number of grid steps (costs at most one extra ~0.35us step) so the
        # "parallel" batch axis load-balances across v7x's two TensorCores.
        if steps % 2 == 1 and B >= 2:
            tb = _cdiv(B, steps + 1)
            steps = _cdiv(B, tb)

        needed = (2 * tb * (S + S1) * H + 2 * (S1 * H + H)) * dt
        return _call(
            pos_embed_kernel,
            grid=(steps,),
            in_specs=[
                ((tb, S, H), lambda b: (b, 0, 0)),     # patch embeddings (streamed)
                ((1, 1, H), lambda b: (0, 0, 0)),      # cls (resident)
                ((1, S1, H), lambda b: (0, 0, 0)),     # pos (resident)
            ],
            out_spec=((tb, S1, H), lambda b: (b, 0, 0)),
            dim_sem=("parallel",),
            needed_bytes=needed,
            args=(embeddings, cls_token, position_embeddings),
            buffered_params={1, 2},
        )

    # -------- Fallback: a single-sample (S, H) slab exceeds the budget -> also tile the
    # sequence axis.  Pad the input with one dummy leading row so input / pos / output
    # sequence axes align block-for-block; the dummy row is overwritten with the CLS token
    # in the first sequence chunk.  (The pad is one extra HBM copy, accepted on this rare
    # robustness path.) --------
    emb_pad = jnp.pad(embeddings, ((0, 0), (1, 0), (0, 0)))

    per_row_bytes = 2 * 3 * H * dt                      # double-buffered emb_pad + pos + out rows
    ts = max(8, (budget // per_row_bytes) // 8 * 8)     # sublane-aligned sequence chunk
    ts = min(ts, max(8, (S1 // 8) * 8))
    tbf = max(1, min(B, budget // (per_row_bytes * ts)))

    needed = (2 * (2 * tbf + 1) * ts * H + 2 * H) * dt
    return _call(
        pos_embed_seq_kernel,
        grid=(_cdiv(B, tbf), _cdiv(S1, ts)),
        in_specs=[
            ((tbf, ts, H), lambda b, s: (b, s, 0)),     # padded patch embeddings (streamed)
            ((1, 1, H), lambda b, s: (0, 0, 0)),        # cls (resident)
            ((1, ts, H), lambda b, s: (0, s, 0)),       # pos chunk (streamed)
        ],
        out_spec=((tbf, ts, H), lambda b, s: (b, s, 0)),
        dim_sem=("parallel", "parallel"),
        needed_bytes=needed,
        args=(emb_pad, cls_token, position_embeddings),
        buffered_params={1},
    )


def position_embedding_ref(embeddings, cls_token, position_embeddings):
    B = embeddings.shape[0]
    cls = jnp.broadcast_to(cls_token, (B, 1, cls_token.shape[-1]))
    return jnp.concatenate([cls, embeddings], axis=1) + position_embeddings


if __name__ == "__main__":
    batch, num_patches, hidden = 2, 8, 32

    key = jax.random.PRNGKey(0)
    k_emb, k_cls, k_pos = jax.random.split(key, 3)

    # Deterministic "parameters" (stand-ins for nn.Parameter init).
    embeddings = jax.random.normal(k_emb, (batch, num_patches, hidden), jnp.float32)
    cls_token = 0.02 * jax.random.normal(k_cls, (1, 1, hidden), jnp.float32)
    position_embeddings = 0.02 * jax.random.normal(
        k_pos, (1, num_patches + 1, hidden), jnp.float32
    )

    ref = position_embedding_ref(embeddings, cls_token, position_embeddings)

    # Main (batch-tiled) path.
    out = jax.block_until_ready(
        position_embedding(embeddings, cls_token, position_embeddings)
    )
    assert out.shape == (batch, num_patches + 1, hidden)
    assert jnp.allclose(out, ref, atol=1e-6, rtol=1e-6)

    # Sequence-tiled fallback path (forced via an artificially tiny block budget).
    out_fb = jax.block_until_ready(
        position_embedding(embeddings, cls_token, position_embeddings,
                           _force_block_budget_bytes=4096)
    )
    assert jnp.allclose(out_fb, ref, atol=1e-6, rtol=1e-6)

    print("KERNEL_OK")
</pallas_src>

<mosaic_0001>
module attributes {stable_mosaic.version = 11 : i64} {
  func.func @pos_embed_kernel(%arg0: i32, %arg1: memref<1x8x32xf32, #tpu.memory_space<vmem>>, %arg2: memref<1x1x32xf32, #tpu.memory_space<vmem>>, %arg3: memref<1x9x32xf32, #tpu.memory_space<vmem>>, %arg4: memref<1x9x32xf32, #tpu.memory_space<vmem>>) attributes {dimension_semantics = [#tpu.dimension_semantics<parallel>], iteration_bounds = array<i64: 2>, scalar_prefetch = 0 : i64, scratch_operands = 0 : i64, tpu.core_type = #tpu.core_type<tc>, window_params = [{transform_indices = @transform_0, window_bounds = array<i64: 1, 8, 32>}, {pipeline_mode = #tpu.pipeline_mode<synchronous>, transform_indices = @transform_1, window_bounds = array<i64: 1, 1, 32>}, {pipeline_mode = #tpu.pipeline_mode<synchronous>, transform_indices = @transform_2, window_bounds = array<i64: 1, 9, 32>}, {transform_indices = @transform_3, window_bounds = array<i64: 1, 9, 32>}]} {
    %c0 = arith.constant 0 : index
    %c0_0 = arith.constant 0 : index
    %c0_1 = arith.constant 0 : index
    %0 = vector.load %arg2[%c0, %c0_0, %c0_1] : memref<1x1x32xf32, #tpu.memory_space<vmem>>, vector<1x1x32xf32>
    %c0_2 = arith.constant 0 : index
    %c0_3 = arith.constant 0 : index
    %c0_4 = arith.constant 0 : index
    %1 = vector.load %arg3[%c0_2, %c0_3, %c0_4] : memref<1x9x32xf32, #tpu.memory_space<vmem>>, vector<1x1x32xf32>
    %2 = arith.addf %0, %1 : vector<1x1x32xf32>
    %c0_5 = arith.constant 0 : index
    %c0_6 = arith.constant 0 : index
    %c0_7 = arith.constant 0 : index
    %3 = vector.load %arg4[%c0_5, %c0_6, %c0_7] : memref<1x9x32xf32, #tpu.memory_space<vmem>>, vector<1x1x32xf32>
    tpu.vector_store %arg4[%c0_5, %c0_6, %c0_7], %2 {strides = array<i32>} : memref<1x9x32xf32, #tpu.memory_space<vmem>>, vector<1x1x32xf32>,
    %c0_8 = arith.constant 0 : index
    %c0_9 = arith.constant 0 : index
    %c0_10 = arith.constant 0 : index
    %4 = vector.load %arg1[%c0_8, %c0_9, %c0_10] : memref<1x8x32xf32, #tpu.memory_space<vmem>>, vector<1x8x32xf32>
    %c0_11 = arith.constant 0 : index
    %c1 = arith.constant 1 : index
    %c0_12 = arith.constant 0 : index
    %5 = vector.load %arg3[%c0_11, %c1, %c0_12] : memref<1x9x32xf32, #tpu.memory_space<vmem>>, vector<1x8x32xf32>
    %6 = arith.addf %4, %5 : vector<1x8x32xf32>
    %c0_13 = arith.constant 0 : index
    %c1_14 = arith.constant 1 : index
    %c0_15 = arith.constant 0 : index
    %7 = vector.load %arg4[%c0_13, %c1_14, %c0_15] : memref<1x9x32xf32, #tpu.memory_space<vmem>>, vector<1x8x32xf32>
    tpu.vector_store %arg4[%c0_13, %c1_14, %c0_15], %6 {strides = array<i32>} : memref<1x9x32xf32, #tpu.memory_space<vmem>>, vector<1x8x32xf32>,
    return
  }
  func.func @transform_0(%arg0: i32) -> (i32, i32, i32) {
    %c0_i32 = arith.constant 0 : i32
    %c0_i32_0 = arith.constant 0 : i32
    %c0_i32_1 = arith.constant 0 : i32
    return %arg0, %c0_i32, %c0_i32_0 : i32, i32, i32
  }
  func.func @transform_1(%arg0: i32) -> (i32, i32, i32) {
    %c0_i32 = arith.constant 0 : i32
    %c0_i32_0 = arith.constant 0 : i32
    %c0_i32_1 = arith.constant 0 : i32
    %c0_i32_2 = arith.constant 0 : i32
    return %c0_i32, %c0_i32_0, %c0_i32_1 : i32, i32, i32
  }
  func.func @transform_2(%arg0: i32) -> (i32, i32, i32) {
    %c0_i32 = arith.constant 0 : i32
    %c0_i32_0 = arith.constant 0 : i32
    %c0_i32_1 = arith.constant 0 : i32
    %c0_i32_2 = arith.constant 0 : i32
    return %c0_i32, %c0_i32_0, %c0_i32_1 : i32, i32, i32
  }
  func.func @transform_3(%arg0: i32) -> (i32, i32, i32) {
    %c0_i32 = arith.constant 0 : i32
    %c0_i32_0 = arith.constant 0 : i32
    %c0_i32_1 = arith.constant 0 : i32
    return %arg0, %c0_i32, %c0_i32_0 : i32, i32, i32
  }
}

module attributes {stable_mosaic.version = 11 : i64} {
  func.func @pos_embed_kernel(%arg0: i32, %arg1: memref<1x8x32xf32, #tpu.memory_space<vmem>>, %arg2: memref<1x1x32xf32, #tpu.memory_space<vmem>>, %arg3: memref<1x9x32xf32, #tpu.memory_space<vmem>>, %arg4: memref<1x9x32xf32, #tpu.memory_space<vmem>>) attributes {dimension_semantics = [#tpu.dimension_semantics<parallel>], iteration_bounds = array<i64: 2>, scalar_prefetch = 0 : i64, scratch_operands = 0 : i64, tpu.core_type = #tpu.core_type<tc>, window_params = [{transform_indices = @transform_0, window_bounds = array<i64: 1, 8, 32>}, {pipeline_mode = #tpu.pipeline_mode<synchronous>, transform_indices = @transform_1, window_bounds = array<i64: 1, 1, 32>}, {pipeline_mode = #tpu.pipeline_mode<synchronous>, transform_indices = @transform_2, window_bounds = array<i64: 1, 9, 32>}, {transform_indices = @transform_3, window_bounds = array<i64: 1, 9, 32>}]} {
    %c0 = arith.constant 0 : index
    %c0_0 = arith.constant 0 : index
    %c0_1 = arith.constant 0 : index
    %0 = vector.load %arg2[%c0, %c0_0, %c0_1] : memref<1x1x32xf32, #tpu.memory_space<vmem>>, vector<1x1x32xf32>
    %c0_2 = arith.constant 0 : index
    %c0_3 = arith.constant 0 : index
    %c0_4 = arith.constant 0 : index
    %1 = vector.load %arg3[%c0_2, %c0_3, %c0_4] : memref<1x9x32xf32, #tpu.memory_space<vmem>>, vector<1x1x32xf32>
    %2 = arith.addf %0, %1 : vector<1x1x32xf32>
    %c0_5 = arith.constant 0 : index
    %c0_6 = arith.constant 0 : index
    %c0_7 = arith.constant 0 : index
    %3 = vector.load %arg4[%c0_5, %c0_6, %c0_7] : memref<1x9x32xf32, #tpu.memory_space<vmem>>, vector<1x1x32xf32>
    tpu.vector_store %arg4[%c0_5, %c0_6, %c0_7], %2 {strides = array<i32>} : memref<1x9x32xf32, #tpu.memory_space<vmem>>, vector<1x1x32xf32>,
    %c0_8 = arith.constant 0 : index
    %c0_9 = arith.constant 0 : index
    %c0_10 = arith.constant 0 : index
    %4 = vector.load %arg1[%c0_8, %c0_9, %c0_10] : memref<1x8x32xf32, #tpu.memory_space<vmem>>, vector<1x8x32xf32>
    %c0_11 = arith.constant 0 : index
    %c1 = arith.constant 1 : index
    %c0_12 = arith.constant 0 : index
    %5 = vector.load %arg3[%c0_11, %c1, %c0_12] : memref<1x9x32xf32, #tpu.memory_space<vmem>>, vector<1x8x32xf32>
    %6 = arith.addf %4, %5 : vector<1x8x32xf32>
    %c0_13 = arith.constant 0 : index
    %c1_14 = arith.constant 1 : index
    %c0_15 = arith.constant 0 : index
    %7 = vector.load %arg4[%c0_13, %c1_14, %c0_15] : memref<1x9x32xf32, #tpu.memory_space<vmem>>, vector<1x8x32xf32>
    tpu.vector_store %arg4[%c0_13, %c1_14, %c0_15], %6 {strides = array<i32>} : memref<1x9x32xf32, #tpu.memory_space<vmem>>, vector<1x8x32xf32>,
    return
  }
  func.func @transform_0(%arg0: i32) -> (i32, i32, i32) {
    %c0_i32 = arith.constant 0 : i32
    %c0_i32_0 = arith.constant 0 : i32
    %c0_i32_1 = arith.constant 0 : i32
    return %arg0, %c0_i32, %c0_i32_0 : i32, i32, i32
  }
  func.func @transform_1(%arg0: i32) -> (i32, i32, i32) {
    %c0_i32 = arith.constant 0 : i32
    %c0_i32_0 = arith.constant 0 : i32
    %c0_i32_1 = arith.constant 0 : i32
    %c0_i32_2 = arith.constant 0 : i32
    return %c0_i32, %c0_i32_0, %c0_i32_1 : i32, i32, i32
  }
  func.func @transform_2(%arg0: i32) -> (i32, i32, i32) {
    %c0_i32 = arith.constant 0 : i32
    %c0_i32_0 = arith.constant 0 : i32
    %c0_i32_1 = arith.constant 0 : i32
    %c0_i32_2 = arith.constant 0 : i32
    return %c0_i32, %c0_i32_0, %c0_i32_1 : i32, i32, i32
  }
  func.func @transform_3(%arg0: i32) -> (i32, i32, i32) {
    %c0_i32 = arith.constant 0 : i32
    %c0_i32_0 = arith.constant 0 : i32
    %c0_i32_1 = arith.constant 0 : i32
    return %arg0, %c0_i32, %c0_i32_0 : i32, i32, i32
  }
}

</mosaic_0001>

<bundles_post_ra>
// kernel: tpu_custom_call.1
= control target key start
LH: loop header
LB: loop body
LE: loop exit
PB: predicated region body
PF: predicated region fallthrough
CT: control target
= control target key end

     0   :  { %s256_s12 = smov 0   ;;  %s295_s0 = inlined_call_operand.vmem [shape: f32[2,8,32], index: 0, kind: input, shape index: {}]   ;;  %s296_s1 = inlined_call_operand.vmem [shape: f32[1,1,32], index: 1, kind: input, shape index: {}]   ;;  %s297_s2 = inlined_call_operand.vmem [shape: f32[1,9,32], index: 2, kind: input, shape index: {}]   ;;  %s298_s3 = inlined_call_operand.vmem [shape: f32[2,9,32], index: 3, kind: output, shape index: {}]  }
   0x1 LB: > { %s233_s13 = sadd.s32 4294967295, %s258_s12   ;;  %p237_p0 = scmp.ge.s32.totalorder %s258_s12, 1  ;;  %s258_s12 = sphi %s256_s12, %s13_s12  }
   0x2   : > { %p136_p1 = scmp.lt.s32.totalorder %s258_s12, 3 }
   0x4   : > { %p137_p2 = pnand %p237_p0, %p136_p1 }
   0x5   : > { %p159_p3 = scmp.lt.s32.totalorder (!%p137_p2), %s233_s13, 1 }
   0x6   : > { %140 = sbr.rel (%p137_p2) target bundleno = 18 (0x12), region = 32 }
   0xb   : > { %v168_v0 = vld [vmem:[%s296_s1] sm:$0x1]  ;;  %s300_s13 = smov (!%p159_p3, %s233_s13), 1  ;;  %vm171_vm0 = vcmask 253952   ;;  %v174_v3 = vld [vmem:[%s297_s2 + $0x1] sm:$0xff]  ;;  %vm176_vm1 = vcmask 261120  }
   0xc   : > { %v169_v1 = vld [vmem:[%s297_s2] sm:$0x1]  ;;  %s243_s18 = sshll.u32 %s300_s13, 4  ;;  %s238_s19 = sshll.u32 %s300_s13, 3 }
   0xd   : > { %v170_v2 = vadd.f32 %v169_v1, %v168_v0  ;;  %s167_s24 = scalar_lea.vmem %s298_s3, %s243_s18  ;;  %s162_s27 = scalar_lea.vmem %s295_s0, %s238_s19 }
   0xe   : > { %v173_v4 = vld [vmem:[%s162_s27] sm:$0xff] }
   0xf   : > { %172 = vst.msk [vmem:[%s167_s24] sm:$0x1] %vm171_vm0, %v170_v2  ;;  %v175_v5 = vadd.f32 %v174_v3, %v173_v4 }
  0x11   : > { %177 = vst.msk [vmem:[%s167_s24 + $0x1] sm:$0xff] %vm176_vm1, %v175_v5 }
  0x12 PF: > { %s13_s12 = sadd.s32 1, %s258_s12  }
  0x13   : > { %p10_p4 = scmp.ge.s32.totalorder %s13_s12, 4  }
  0x15   :  { %12 = sbr.rel (!%p10_p4) target bundleno = 1 (0x1), region = 62 }

// kernel: tpu_custom_call.1
= control target key start
LH: loop header
LB: loop body
LE: loop exit
PB: predicated region body
PF: predicated region fallthrough
CT: control target
= control target key end

     0   :  { %s256_s12 = smov 0   ;;  %s295_s0 = inlined_call_operand.vmem [shape: f32[2,8,32], index: 0, kind: input, shape index: {}]   ;;  %s296_s1 = inlined_call_operand.vmem [shape: f32[1,1,32], index: 1, kind: input, shape index: {}]   ;;  %s297_s2 = inlined_call_operand.vmem [shape: f32[1,9,32], index: 2, kind: input, shape index: {}]   ;;  %s298_s3 = inlined_call_operand.vmem [shape: f32[2,9,32], index: 3, kind: output, shape index: {}]  }
   0x1 LB: > { %s233_s13 = sadd.s32 4294967295, %s258_s12   ;;  %p237_p0 = scmp.ge.s32.totalorder %s258_s12, 1  ;;  %s258_s12 = sphi %s256_s12, %s13_s12  }
   0x2   : > { %p136_p1 = scmp.lt.s32.totalorder %s258_s12, 3 }
   0x4   : > { %p137_p2 = pnand %p237_p0, %p136_p1 }
   0x5   : > { %p159_p3 = scmp.lt.s32.totalorder (!%p137_p2), %s233_s13, 1 }
   0x6   : > { %140 = sbr.rel (%p137_p2) target bundleno = 18 (0x12), region = 32 }
   0xb   : > { %v168_v0 = vld [vmem:[%s296_s1] sm:$0x1]  ;;  %s300_s13 = smov (!%p159_p3, %s233_s13), 1  ;;  %vm171_vm0 = vcmask 253952   ;;  %v174_v3 = vld [vmem:[%s297_s2 + $0x1] sm:$0xff]  ;;  %vm176_vm1 = vcmask 261120  }
   0xc   : > { %v169_v1 = vld [vmem:[%s297_s2] sm:$0x1]  ;;  %s243_s18 = sshll.u32 %s300_s13, 4  ;;  %s238_s19 = sshll.u32 %s300_s13, 3 }
   0xd   : > { %v170_v2 = vadd.f32 %v169_v1, %v168_v0  ;;  %s167_s24 = scalar_lea.vmem %s298_s3, %s243_s18  ;;  %s162_s27 = scalar_lea.vmem %s295_s0, %s238_s19 }
   0xe   : > { %v173_v4 = vld [vmem:[%s162_s27] sm:$0xff] }
   0xf   : > { %172 = vst.msk [vmem:[%s167_s24] sm:$0x1] %vm171_vm0, %v170_v2  ;;  %v175_v5 = vadd.f32 %v174_v3, %v173_v4 }
  0x11   : > { %177 = vst.msk [vmem:[%s167_s24 + $0x1] sm:$0xff] %vm176_vm1, %v175_v5 }
  0x12 PF: > { %s13_s12 = sadd.s32 1, %s258_s12  }
  0x13   : > { %p10_p4 = scmp.ge.s32.totalorder %s13_s12, 4  }
  0x15   :  { %12 = sbr.rel (!%p10_p4) target bundleno = 1 (0x1), region = 62 }

</bundles_post_ra>
